<compile_context>
chip_gen: v7x
topology: tpu7x:2x2x1
jax: 0.10.0
libtpu: 0.0.40
codegen_flags: <defaults>
</compile_context>

<pallas_src>
import functools

import jax
import jax.numpy as jnp
import numpy as np
from jax.experimental import pallas as pl
from jax.experimental.pallas import tpu as pltpu


# ---------------------------------------------------------------------------
# Kernel
# ---------------------------------------------------------------------------
def _tcn_se_kernel(x_ref, w1t_ref, w2t_ref, bias_ref, fc1_ref, fc2_ref,
                   mask_ref, pool_ref, expand_ref, o_ref, *, ksize, dil, n_out):
    """One grid step processes `bblk` whole batch elements packed on lanes.

    x_ref     : (Cin,  bblk*L)        activations, lane index = b*L + l
    w1t_ref   : ((K+1)*Cout, Cin)     conv1 tap j rows [j*C,(j+1)*C); last
                                      block = 1x1 downsample weights
    w2t_ref   : (K*Cout, Cout)        conv2 tap rows
    bias_ref  : (Cout, 3)             columns [b1 | b2 | b_downsample]
    fc1_ref   : (Chid, Cout)          SE squeeze FC (bias-free)
    fc2_ref   : (Cout, Chid)          SE excite  FC (bias-free)
    mask_ref  : (K, bblk*L)           row j = causal mask for shift (K-1-j)*dil
    pool_ref  : (bblk*L, bblk)        per-segment mean-pool matrix
    expand_ref: (bblk, bblk*L)        per-segment broadcast matrix
    o_ref     : (Cout, bblk*L)
    """
    cdt = w1t_ref.dtype                             # MXU operand dtype (f32/bf16)
    x = x_ref[...].astype(cdt)                      # (Cin, lp)

    def shifted(inp, j):
        shift = (ksize - 1 - j) * dil               # static
        if shift == 0:
            return inp
        rolled = pltpu.roll(inp, shift=shift, axis=1)     # XLU lane rotate
        return rolled * mask_ref[j:j + 1, :]              # zero the left context

    # ---- conv1 (+ fused 1x1 downsample residual) -> chomp -> ReLU ----------
    # shift-0 tap and the 1x1 downsample share one stacked MXU matmul.
    pre = jnp.dot(w1t_ref[(ksize - 1) * n_out:(ksize + 1) * n_out, :], x,
                  preferred_element_type=jnp.float32)      # (2*Cout, lp)
    acc1 = pre[:n_out]
    res = pre[n_out:] + bias_ref[:, 2:3]                   # downsample(x) + bd
    for j in range(ksize - 1):                             # static, unrolled
        acc1 = acc1 + jnp.dot(w1t_ref[j * n_out:(j + 1) * n_out, :],
                              shifted(x, j),
                              preferred_element_type=jnp.float32)
    h1 = jnp.maximum(acc1 + bias_ref[:, 0:1], 0.0)         # dropout = identity

    # ---- conv2 -> chomp -> ReLU ---------------------------------------------
    h1c = h1.astype(cdt)
    acc2 = jnp.dot(w2t_ref[(ksize - 1) * n_out:ksize * n_out, :], h1c,
                   preferred_element_type=jnp.float32)
    for j in range(ksize - 1):
        acc2 = acc2 + jnp.dot(w2t_ref[j * n_out:(j + 1) * n_out, :],
                              shifted(h1c, j),
                              preferred_element_type=jnp.float32)
    h2 = jnp.maximum(acc2 + bias_ref[:, 1:2], 0.0)

    # ---- SE: per-segment avg pool, FC/ReLU/FC/Sigmoid, channel scale --------
    s = jnp.dot(h2, pool_ref[...], preferred_element_type=jnp.float32)   # (Cout, bblk)
    z = jnp.maximum(jnp.dot(fc1_ref[...], s,
                            preferred_element_type=jnp.float32), 0.0)
    gate = jax.nn.sigmoid(jnp.dot(fc2_ref[...], z,
                                  preferred_element_type=jnp.float32))
    gate_full = jnp.dot(gate, expand_ref[...],
                        preferred_element_type=jnp.float32)              # (Cout, lp)

    o_ref[...] = (h2 * gate_full + res).astype(o_ref.dtype)


# ---------------------------------------------------------------------------
# Wrapper
# ---------------------------------------------------------------------------
def tcn_se_block(x, params, *, ksize, dil, matmul_dtype=jnp.float32,
                 batch_block=None):
    """x: (B, Cin, L) float32 -> (B, Cout, L) float32."""
    B, Cin, L = x.shape
    w1t = params["w1t"].astype(matmul_dtype)      # ((K+1)*Cout, Cin)
    w2t = params["w2t"].astype(matmul_dtype)      # (K*Cout, Cout)
    bias = params["bias"].astype(jnp.float32)     # (Cout, 3)
    fc1 = params["fc1"].astype(jnp.float32)
    fc2 = params["fc2"].astype(jnp.float32)
    Cout = w2t.shape[-1]
    Chid = fc1.shape[0]

    # ---- lane-block (bblk*L) selection, sized against a VMEM budget --------
    # Rough per-lane working set: double-buffered in/out tiles + f32
    # temporaries (h1/h2/res/gate/acc) + matmul-dtype copies + masks.
    per_lane_bytes = 4 * (6 * Cin + 10 * Cout + ksize + 4)
    lane_budget = 12 * 1024 * 1024                # safe on v5e/v6e/v7x
    lane_cap = max(L, min(32768, lane_budget // per_lane_bytes))

    if batch_block is None:
        best = None
        for d in range(1, B + 1):
            if B % d:
                continue
            lp_d = d * L
            if lp_d > lane_cap:
                continue
            if (B // d) > 1 and lp_d % 128 != 0:
                continue                          # (8,128) block legality
            best = d
        if best is None:
            best = B                              # single full-array block
            # TODO(synk): pad L to a multiple of 128 (and B to a composite) so
            # long / odd sequences can be tiled instead of forced into one block.
        batch_block = best
    bblk = batch_block
    lp = bblk * L
    grid = (B // bblk,)
    # TODO(synk): on v7x prefer an even grid >= 2 (CORE_PARALLEL over 2 TCs) and
    # tile long L with a (K-1)*dil halo instead of whole-segment lane packing.

    # batch onto lanes: (B, Cin, L) -> (Cin, B*L), column index = b*L + l
    x2 = jnp.transpose(x, (1, 0, 2)).reshape(Cin, B * L)

    # ---- loop-invariant constants, built once on the host -------------------
    loc = np.arange(lp) % L
    masks = np.stack([(loc >= (ksize - 1 - j) * dil) for j in range(ksize)],
                     axis=0).astype(np.float32)                 # (K, lp)
    seg = np.arange(lp) // L
    pool = (seg[:, None] == np.arange(bblk)[None, :]).astype(np.float32) / L
    expand = (seg[None, :] == np.arange(bblk)[:, None]).astype(np.float32)
    masks = jnp.asarray(masks, dtype=matmul_dtype)
    pool = jnp.asarray(pool, dtype=jnp.float32)                 # (lp, bblk)
    expand = jnp.asarray(expand, dtype=jnp.float32)             # (bblk, lp)

    kernel = functools.partial(_tcn_se_kernel, ksize=ksize, dil=dil, n_out=Cout)

    flops = (2 * Cout * Cin * B * L * (ksize + 1)       # conv1 taps + residual
             + 2 * Cout * Cout * B * L * ksize          # conv2 taps
             + 4 * Cout * B * L * bblk                  # SE pool + expand matmuls
             + 4 * Chid * Cout * B                      # SE FCs
             + 8 * Cout * B * L)                        # bias/ReLU/gate/residual
    bytes_accessed = (4 * (Cin + Cout) * B * L
                      + w1t.dtype.itemsize * w1t.size
                      + w2t.dtype.itemsize * w2t.size
                      + masks.dtype.itemsize * masks.size
                      + 4 * (bias.size + fc1.size + fc2.size
                             + pool.size + expand.size))

    out2 = pl.pallas_call(
        kernel,
        out_shape=jax.ShapeDtypeStruct((Cout, B * L), jnp.float32),
        grid_spec=pltpu.PrefetchScalarGridSpec(
            num_scalar_prefetch=0,
            grid=grid,
            in_specs=[
                pl.BlockSpec((Cin, lp), lambda g: (0, g)),        # activations
                pl.BlockSpec(w1t.shape, lambda g: (0, 0)),        # conv1 + 1x1 residual
                pl.BlockSpec(w2t.shape, lambda g: (0, 0)),        # conv2
                pl.BlockSpec(bias.shape, lambda g: (0, 0)),       # biases
                pl.BlockSpec(fc1.shape, lambda g: (0, 0)),        # SE fc1
                pl.BlockSpec(fc2.shape, lambda g: (0, 0)),        # SE fc2
                pl.BlockSpec(masks.shape, lambda g: (0, 0)),      # causal masks
                pl.BlockSpec(pool.shape, lambda g: (0, 0)),       # SE pool matrix
                pl.BlockSpec(expand.shape, lambda g: (0, 0)),     # SE expand matrix
            ],
            out_specs=pl.BlockSpec((Cout, lp), lambda g: (0, g)),
        ),
        compiler_params=pltpu.CompilerParams(
            dimension_semantics=("parallel",),
            vmem_limit_bytes=64 * 1024 * 1024),
        cost_estimate=pl.CostEstimate(
            flops=int(flops),
            transcendentals=int(Cout * B),
            bytes_accessed=int(bytes_accessed)),
    )(x2, w1t, w2t, bias, fc1, fc2, masks, pool, expand)

    return jnp.transpose(out2.reshape(Cout, B, L), (1, 0, 2))


# ---------------------------------------------------------------------------
# Parameter construction (matches the PyTorch module's shapes / init)
# ---------------------------------------------------------------------------
def init_params(key, Cin, Cout, ksize, reduction_ratio):
    Chid = Cout // reduction_ratio
    ks = jax.random.split(key, 8)

    def weight_normed(k, shape):
        # weight_norm(Conv1d): W = g * v / ||v|| per out-channel, g init = ||v||.
        v = 0.01 * jax.random.normal(k, shape, jnp.float32)
        nrm = jnp.sqrt(jnp.sum(v * v, axis=(1, 2), keepdims=True))
        return nrm * v / nrm

    w1 = weight_normed(ks[0], (Cout, Cin, ksize))     # conv1.weight (O, I, K)
    w2 = weight_normed(ks[1], (Cout, Cout, ksize))    # conv2.weight
    b1 = 0.05 * jax.random.normal(ks[2], (Cout,), jnp.float32)
    b2 = 0.05 * jax.random.normal(ks[3], (Cout,), jnp.float32)
    fc1 = jax.random.normal(ks[4], (Chid, Cout), jnp.float32) / jnp.sqrt(Cout)
    fc2 = jax.random.normal(ks[5], (Cout, Chid), jnp.float32) / jnp.sqrt(Chid)
    wd = 0.01 * jax.random.normal(ks[6], (Cout, Cin), jnp.float32)  # 1x1 downsample
    bd = 0.05 * jax.random.normal(ks[7], (Cout,), jnp.float32)
    # Note: when Cin == Cout the PyTorch module uses an identity residual;
    # that case is expressed here by wd = I, bd = 0.

    # ---- pack for the kernel ------------------------------------------------
    # conv taps stacked row-wise (one (Cout, Cin) block per tap); the 1x1
    # downsample rides below the shift-0 tap block of conv1.
    w1t = jnp.concatenate([w1[:, :, j] for j in range(ksize)] + [wd], axis=0)
    w2t = jnp.concatenate([w2[:, :, j] for j in range(ksize)], axis=0)
    bias = jnp.stack([b1, b2, bd], axis=1)            # (Cout, 3)

    return dict(w1=w1, b1=b1, w2=w2, b2=b2, fc1=fc1, fc2=fc2, wd=wd, bd=bd,
                w1t=w1t, w2t=w2t, bias=bias)


# ---------------------------------------------------------------------------
# Pure-JAX reference (identical semantics, independent of the kernel packing)
# ---------------------------------------------------------------------------
def tcn_se_ref(x, params, *, ksize, dil, pad):
    w1, b1, w2, b2 = params["w1"], params["b1"], params["w2"], params["b2"]
    fc1, fc2, wd, bd = params["fc1"], params["fc2"], params["wd"], params["bd"]
    L = x.shape[-1]

    def causal_conv(inp, w, b):
        inp_p = jnp.pad(inp, ((0, 0), (0, 0), (pad, 0)))
        acc = 0.0
        for j in range(ksize):
            acc = acc + jnp.einsum('oi,bil->bol', w[:, :, j],
                                   inp_p[:, :, j * dil:j * dil + L])
        return acc + b[None, :, None]

    h1 = jax.nn.relu(causal_conv(x, w1, b1))
    h2 = jax.nn.relu(causal_conv(h1, w2, b2))
    s = jnp.mean(h2, axis=-1)                          # (B, Cout)
    z = jax.nn.relu(s @ fc1.T)
    gate = jax.nn.sigmoid(z @ fc2.T)
    out = h2 * gate[:, :, None]
    res = jnp.einsum('oi,bil->bol', wd, x) + bd[None, :, None]
    return out + res


if __name__ == "__main__":
    # small, forward-consistent shapes
    B, Cin, Cout, L = 2, 8, 16, 128
    ksize, dil, reduction_ratio = 3, 1, 4
    pad = (ksize - 1) * dil                            # causal padding, chomped
    # TODO(synk): stride > 1 unsupported (standard TCN uses stride=1).

    key = jax.random.PRNGKey(0)
    kx, kp = jax.random.split(key)
    x = jax.random.normal(kx, (B, Cin, L), jnp.float32)
    params = init_params(kp, Cin, Cout, ksize, reduction_ratio)

    y_ref = tcn_se_ref(x, params, ksize=ksize, dil=dil, pad=pad)

    # f32 MXU operands
    y = jax.block_until_ready(
        tcn_se_block(x, params, ksize=ksize, dil=dil,
                     matmul_dtype=jnp.float32))
    np.testing.assert_allclose(np.asarray(y), np.asarray(y_ref),
                               rtol=1e-2, atol=2e-3)

    # bf16 MXU operands, f32 accumulation (halves operand vld/vst and weight
    # residency on every generation; elementwise work stays f32)
    y_bf16 = jax.block_until_ready(
        tcn_se_block(x, params, ksize=ksize, dil=dil,
                     matmul_dtype=jnp.bfloat16))
    np.testing.assert_allclose(np.asarray(y_bf16), np.asarray(y_ref),
                               rtol=5e-2, atol=1e-2)

    print("KERNEL_OK")
</pallas_src>

<mosaic_0001>
module attributes {stable_mosaic.version = 11 : i64} {
  func.func @_tcn_se_kernel(%arg0: i32, %arg1: memref<8x256xf32, #tpu.memory_space<vmem>>, %arg2: memref<64x8xf32, #tpu.memory_space<vmem>>, %arg3: memref<48x16xf32, #tpu.memory_space<vmem>>, %arg4: memref<16x3xf32, #tpu.memory_space<vmem>>, %arg5: memref<4x16xf32, #tpu.memory_space<vmem>>, %arg6: memref<16x4xf32, #tpu.memory_space<vmem>>, %arg7: memref<3x256xf32, #tpu.memory_space<vmem>>, %arg8: memref<256x2xf32, #tpu.memory_space<vmem>>, %arg9: memref<2x256xf32, #tpu.memory_space<vmem>>, %arg10: memref<16x256xf32, #tpu.memory_space<vmem>>) attributes {dimension_semantics = [#tpu.dimension_semantics<parallel>], iteration_bounds = array<i64: 1>, scalar_prefetch = 0 : i64, scratch_operands = 0 : i64, tpu.core_type = #tpu.core_type<tc>, window_params = [{transform_indices = @transform_0, window_bounds = array<i64: 8, 256>}, {pipeline_mode = #tpu.pipeline_mode<synchronous>, transform_indices = @transform_1, window_bounds = array<i64: 64, 8>}, {pipeline_mode = #tpu.pipeline_mode<synchronous>, transform_indices = @transform_2, window_bounds = array<i64: 48, 16>}, {pipeline_mode = #tpu.pipeline_mode<synchronous>, transform_indices = @transform_3, window_bounds = array<i64: 16, 3>}, {pipeline_mode = #tpu.pipeline_mode<synchronous>, transform_indices = @transform_4, window_bounds = array<i64: 4, 16>}, {pipeline_mode = #tpu.pipeline_mode<synchronous>, transform_indices = @transform_5, window_bounds = array<i64: 16, 4>}, {pipeline_mode = #tpu.pipeline_mode<synchronous>, transform_indices = @transform_6, window_bounds = array<i64: 3, 256>}, {pipeline_mode = #tpu.pipeline_mode<synchronous>, transform_indices = @transform_7, window_bounds = array<i64: 256, 2>}, {pipeline_mode = #tpu.pipeline_mode<synchronous>, transform_indices = @transform_8, window_bounds = array<i64: 2, 256>}, {transform_indices = @transform_9, window_bounds = array<i64: 16, 256>}]} {
    %c0 = arith.constant 0 : index
    %c0_0 = arith.constant 0 : index
    %0 = vector.load %arg1[%c0, %c0_0] : memref<8x256xf32, #tpu.memory_space<vmem>>, vector<8x256xf32>
    %c32 = arith.constant 32 : index
    %c0_1 = arith.constant 0 : index
    %1 = vector.load %arg2[%c32, %c0_1] : memref<64x8xf32, #tpu.memory_space<vmem>>, vector<32x8xf32>
    %cst = arith.constant dense<0.000000e+00> : vector<32x256xf32>
    %2 = tpu.matmul %1, %0, %cst {dimension_numbers = #tpu.dot_dimension_numbers<[1], [0], [0], [1], [0, 0, 1, 1], [], []>} : vector<32x8xf32>, vector<8x256xf32>, vector<32x256xf32> -> vector<32x256xf32>
    %3 = vector.extract_strided_slice %2 {offsets = [0, 0], sizes = [16, 256], strides = [1, 1]} : vector<32x256xf32> to vector<16x256xf32>
    %4 = vector.extract_strided_slice %2 {offsets = [16, 0], sizes = [16, 256], strides = [1, 1]} : vector<32x256xf32> to vector<16x256xf32>
    %c0_2 = arith.constant 0 : index
    %c2 = arith.constant 2 : index
    %5 = vector.load %arg4[%c0_2, %c2] : memref<16x3xf32, #tpu.memory_space<vmem>>, vector<16x1xf32>
    %6 = vector.broadcast %5 : vector<16x1xf32> to vector<16x256xf32>
    %7 = arith.addf %4, %6 : vector<16x256xf32>
    %c0_3 = arith.constant 0 : index
    %c0_4 = arith.constant 0 : index
    %8 = vector.load %arg2[%c0_3, %c0_4] : memref<64x8xf32, #tpu.memory_space<vmem>>, vector<16x8xf32>
    %c2_i32 = arith.constant 2 : i32
    %9 = tpu.dynamic_rotate %0 by %c2_i32 dim 1 : vector<8x256xf32>, i32 -> vector<8x256xf32>
    %c0_5 = arith.constant 0 : index
    %c0_6 = arith.constant 0 : index
    %10 = vector.load %arg7[%c0_5, %c0_6] : memref<3x256xf32, #tpu.memory_space<vmem>>, vector<1x256xf32>
    %11 = vector.broadcast %10 : vector<1x256xf32> to vector<8x256xf32>
    %12 = arith.mulf %9, %11 : vector<8x256xf32>
    %cst_7 = arith.constant dense<0.000000e+00> : vector<16x256xf32>
    %13 = tpu.matmul %8, %12, %cst_7 {dimension_numbers = #tpu.dot_dimension_numbers<[1], [0], [0], [1], [0, 0, 1, 1], [], []>} : vector<16x8xf32>, vector<8x256xf32>, vector<16x256xf32> -> vector<16x256xf32>
    %14 = arith.addf %3, %13 : vector<16x256xf32>
    %c16 = arith.constant 16 : index
    %c0_8 = arith.constant 0 : index
    %15 = vector.load %arg2[%c16, %c0_8] : memref<64x8xf32, #tpu.memory_space<vmem>>, vector<16x8xf32>
    %c1_i32 = arith.constant 1 : i32
    %16 = tpu.dynamic_rotate %0 by %c1_i32 dim 1 : vector<8x256xf32>, i32 -> vector<8x256xf32>
    %c1 = arith.constant 1 : index
    %c0_9 = arith.constant 0 : index
    %17 = vector.load %arg7[%c1, %c0_9] : memref<3x256xf32, #tpu.memory_space<vmem>>, vector<1x256xf32>
    %18 = vector.broadcast %17 : vector<1x256xf32> to vector<8x256xf32>
    %19 = arith.mulf %16, %18 : vector<8x256xf32>
    %cst_10 = arith.constant dense<0.000000e+00> : vector<16x256xf32>
    %20 = tpu.matmul %15, %19, %cst_10 {dimension_numbers = #tpu.dot_dimension_numbers<[1], [0], [0], [1], [0, 0, 1, 1], [], []>} : vector<16x8xf32>, vector<8x256xf32>, vector<16x256xf32> -> vector<16x256xf32>
    %21 = arith.addf %14, %20 : vector<16x256xf32>
    %c0_11 = arith.constant 0 : index
    %c0_12 = arith.constant 0 : index
    %22 = vector.load %arg4[%c0_11, %c0_12] : memref<16x3xf32, #tpu.memory_space<vmem>>, vector<16x1xf32>
    %23 = vector.broadcast %22 : vector<16x1xf32> to vector<16x256xf32>
    %24 = arith.addf %21, %23 : vector<16x256xf32>
    %cst_13 = arith.constant 0.000000e+00 : f32
    %25 = vector.broadcast %cst_13 : f32 to vector<16x256xf32>
    %26 = arith.maximumf %24, %25 : vector<16x256xf32>
    %c32_14 = arith.constant 32 : index
    %c0_15 = arith.constant 0 : index
    %27 = vector.load %arg3[%c32_14, %c0_15] : memref<48x16xf32, #tpu.memory_space<vmem>>, vector<16x16xf32>
    %cst_16 = arith.constant dense<0.000000e+00> : vector<16x256xf32>
    %28 = tpu.matmul %27, %26, %cst_16 {dimension_numbers = #tpu.dot_dimension_numbers<[1], [0], [0], [1], [0, 0, 1, 1], [], []>} : vector<16x16xf32>, vector<16x256xf32>, vector<16x256xf32> -> vector<16x256xf32>
    %c0_17 = arith.constant 0 : index
    %c0_18 = arith.constant 0 : index
    %29 = vector.load %arg3[%c0_17, %c0_18] : memref<48x16xf32, #tpu.memory_space<vmem>>, vector<16x16xf32>
    %c2_i32_19 = arith.constant 2 : i32
    %30 = tpu.dynamic_rotate %26 by %c2_i32_19 dim 1 : vector<16x256xf32>, i32 -> vector<16x256xf32>
    %c0_20 = arith.constant 0 : index
    %c0_21 = arith.constant 0 : index
    %31 = vector.load %arg7[%c0_20, %c0_21] : memref<3x256xf32, #tpu.memory_space<vmem>>, vector<1x256xf32>
    %32 = vector.broadcast %31 : vector<1x256xf32> to vector<16x256xf32>
    %33 = arith.mulf %30, %32 : vector<16x256xf32>
    %cst_22 = arith.constant dense<0.000000e+00> : vector<16x256xf32>
    %34 = tpu.matmul %29, %33, %cst_22 {dimension_numbers = #tpu.dot_dimension_numbers<[1], [0], [0], [1], [0, 0, 1, 1], [], []>} : vector<16x16xf32>, vector<16x256xf32>, vector<16x256xf32> -> vector<16x256xf32>
    %35 = arith.addf %28, %34 : vector<16x256xf32>
    %c16_23 = arith.constant 16 : index
    %c0_24 = arith.constant 0 : index
    %36 = vector.load %arg3[%c16_23, %c0_24] : memref<48x16xf32, #tpu.memory_space<vmem>>, vector<16x16xf32>
    %c1_i32_25 = arith.constant 1 : i32
    %37 = tpu.dynamic_rotate %26 by %c1_i32_25 dim 1 : vector<16x256xf32>, i32 -> vector<16x256xf32>
    %c1_26 = arith.constant 1 : index
    %c0_27 = arith.constant 0 : index
    %38 = vector.load %arg7[%c1_26, %c0_27] : memref<3x256xf32, #tpu.memory_space<vmem>>, vector<1x256xf32>
    %39 = vector.broadcast %38 : vector<1x256xf32> to vector<16x256xf32>
    %40 = arith.mulf %37, %39 : vector<16x256xf32>
    %cst_28 = arith.constant dense<0.000000e+00> : vector<16x256xf32>
    %41 = tpu.matmul %36, %40, %cst_28 {dimension_numbers = #tpu.dot_dimension_numbers<[1], [0], [0], [1], [0, 0, 1, 1], [], []>} : vector<16x16xf32>, vector<16x256xf32>, vector<16x256xf32> -> vector<16x256xf32>
    %42 = arith.addf %35, %41 : vector<16x256xf32>
    %c0_29 = arith.constant 0 : index
    %c1_30 = arith.constant 1 : index
    %43 = vector.load %arg4[%c0_29, %c1_30] : memref<16x3xf32, #tpu.memory_space<vmem>>, vector<16x1xf32>
    %44 = vector.broadcast %43 : vector<16x1xf32> to vector<16x256xf32>
    %45 = arith.addf %42, %44 : vector<16x256xf32>
    %cst_31 = arith.constant 0.000000e+00 : f32
    %46 = vector.broadcast %cst_31 : f32 to vector<16x256xf32>
    %47 = arith.maximumf %45, %46 : vector<16x256xf32>
    %c0_32 = arith.constant 0 : index
    %c0_33 = arith.constant 0 : index
    %48 = vector.load %arg8[%c0_32, %c0_33] : memref<256x2xf32, #tpu.memory_space<vmem>>, vector<256x2xf32>
    %cst_34 = arith.constant dense<0.000000e+00> : vector<16x2xf32>
    %49 = tpu.matmul %47, %48, %cst_34 {dimension_numbers = #tpu.dot_dimension_numbers<[1], [0], [0], [1], [0, 0, 1, 1], [], []>} : vector<16x256xf32>, vector<256x2xf32>, vector<16x2xf32> -> vector<16x2xf32>
    %c0_35 = arith.constant 0 : index
    %c0_36 = arith.constant 0 : index
    %50 = vector.load %arg5[%c0_35, %c0_36] : memref<4x16xf32, #tpu.memory_space<vmem>>, vector<4x16xf32>
    %cst_37 = arith.constant dense<0.000000e+00> : vector<4x2xf32>
    %51 = tpu.matmul %50, %49, %cst_37 {dimension_numbers = #tpu.dot_dimension_numbers<[1], [0], [0], [1], [0, 0, 1, 1], [], []>} : vector<4x16xf32>, vector<16x2xf32>, vector<4x2xf32> -> vector<4x2xf32>
    %cst_38 = arith.constant 0.000000e+00 : f32
    %52 = vector.broadcast %cst_38 : f32 to vector<4x2xf32>
    %53 = arith.maximumf %51, %52 : vector<4x2xf32>
    %c0_39 = arith.constant 0 : index
    %c0_40 = arith.constant 0 : index
    %54 = vector.load %arg6[%c0_39, %c0_40] : memref<16x4xf32, #tpu.memory_space<vmem>>, vector<16x4xf32>
    %cst_41 = arith.constant dense<0.000000e+00> : vector<16x2xf32>
    %55 = tpu.matmul %54, %53, %cst_41 {dimension_numbers = #tpu.dot_dimension_numbers<[1], [0], [0], [1], [0, 0, 1, 1], [], []>} : vector<16x4xf32>, vector<4x2xf32>, vector<16x2xf32> -> vector<16x2xf32>
    %56 = arith.negf %55 : vector<16x2xf32>
    %57 = math.exp %56 : vector<16x2xf32>
    %cst_42 = arith.constant 1.000000e+00 : f32
    %58 = vector.broadcast %cst_42 : f32 to vector<16x2xf32>
    %59 = arith.addf %58, %57 : vector<16x2xf32>
    %60 = arith.divf %58, %59 : vector<16x2xf32>
    %c0_43 = arith.constant 0 : index
    %c0_44 = arith.constant 0 : index
    %61 = vector.load %arg9[%c0_43, %c0_44] : memref<2x256xf32, #tpu.memory_space<vmem>>, vector<2x256xf32>
    %cst_45 = arith.constant dense<0.000000e+00> : vector<16x256xf32>
    %62 = tpu.matmul %60, %61, %cst_45 {dimension_numbers = #tpu.dot_dimension_numbers<[1], [0], [0], [1], [0, 0, 1, 1], [], []>} : vector<16x2xf32>, vector<2x256xf32>, vector<16x256xf32> -> vector<16x256xf32>
    %63 = arith.mulf %47, %62 : vector<16x256xf32>
    %64 = arith.addf %63, %7 : vector<16x256xf32>
    %c0_46 = arith.constant 0 : index
    %c0_47 = arith.constant 0 : index
    %65 = vector.load %arg10[%c0_46, %c0_47] : memref<16x256xf32, #tpu.memory_space<vmem>>, vector<16x256xf32>
    tpu.vector_store %arg10[%c0_46, %c0_47], %64 {strides = array<i32>} : memref<16x256xf32, #tpu.memory_space<vmem>>, vector<16x256xf32>,
    return
  }
  func.func @transform_0(%arg0: i32) -> (i32, i32) {
    %c0_i32 = arith.constant 0 : i32
    %c0_i32_0 = arith.constant 0 : i32
    return %c0_i32, %arg0 : i32, i32
  }
  func.func @transform_1(%arg0: i32) -> (i32, i32) {
    %c0_i32 = arith.constant 0 : i32
    %c0_i32_0 = arith.constant 0 : i32
    %c0_i32_1 = arith.constant 0 : i32
    return %c0_i32, %c0_i32_0 : i32, i32
  }
  func.func @transform_2(%arg0: i32) -> (i32, i32) {
    %c0_i32 = arith.constant 0 : i32
    %c0_i32_0 = arith.constant 0 : i32
    %c0_i32_1 = arith.constant 0 : i32
    return %c0_i32, %c0_i32_0 : i32, i32
  }
  func.func @transform_3(%arg0: i32) -> (i32, i32) {
    %c0_i32 = arith.constant 0 : i32
    %c0_i32_0 = arith.constant 0 : i32
    %c0_i32_1 = arith.constant 0 : i32
    return %c0_i32, %c0_i32_0 : i32, i32
  }
  func.func @transform_4(%arg0: i32) -> (i32, i32) {
    %c0_i32 = arith.constant 0 : i32
    %c0_i32_0 = arith.constant 0 : i32
    %c0_i32_1 = arith.constant 0 : i32
    return %c0_i32, %c0_i32_0 : i32, i32
  }
  func.func @transform_5(%arg0: i32) -> (i32, i32) {
    %c0_i32 = arith.constant 0 : i32
    %c0_i32_0 = arith.constant 0 : i32
    %c0_i32_1 = arith.constant 0 : i32
    return %c0_i32, %c0_i32_0 : i32, i32
  }
  func.func @transform_6(%arg0: i32) -> (i32, i32) {
    %c0_i32 = arith.constant 0 : i32
    %c0_i32_0 = arith.constant 0 : i32
    %c0_i32_1 = arith.constant 0 : i32
    return %c0_i32, %c0_i32_0 : i32, i32
  }
  func.func @transform_7(%arg0: i32) -> (i32, i32) {
    %c0_i32 = arith.constant 0 : i32
    %c0_i32_0 = arith.constant 0 : i32
    %c0_i32_1 = arith.constant 0 : i32
    return %c0_i32, %c0_i32_0 : i32, i32
  }
  func.func @transform_8(%arg0: i32) -> (i32, i32) {
    %c0_i32 = arith.constant 0 : i32
    %c0_i32_0 = arith.constant 0 : i32
    %c0_i32_1 = arith.constant 0 : i32
    return %c0_i32, %c0_i32_0 : i32, i32
  }
  func.func @transform_9(%arg0: i32) -> (i32, i32) {
    %c0_i32 = arith.constant 0 : i32
    %c0_i32_0 = arith.constant 0 : i32
    return %c0_i32, %arg0 : i32, i32
  }
}

</mosaic_0001>

<bundles_post_ra>
// kernel: tpu_custom_call.1
= control target key start
LH: loop header
LB: loop body
LE: loop exit
PB: predicated region body
PF: predicated region fallthrough
CT: control target
= control target key end

     0   :  { %14 = vsyncpa [#allocation3], 0  ;;  %s1995_s0 = inlined_call_operand.hbm [shape: f32[8,256], index: 0, kind: input, shape index: {}]   ;;  %s1996_s1 = inlined_call_operand.hbm [shape: f32[64,8], index: 1, kind: input, shape index: {}]   ;;  %s1997_s2 = inlined_call_operand.hbm [shape: f32[48,16], index: 2, kind: input, shape index: {}]   ;;  %s1998_s3 = inlined_call_operand.hbm [shape: f32[16,3], index: 3, kind: input, shape index: {}]   ;;  %s1999_s4 = inlined_call_operand.hbm [shape: f32[4,16], index: 4, kind: input, shape index: {}]   ;;  %s2000_s5 = inlined_call_operand.hbm [shape: f32[16,4], index: 5, kind: input, shape index: {}]   ;;  %s2001_s6 = inlined_call_operand.hbm [shape: f32[3,256], index: 6, kind: input, shape index: {}]   ;;  %s2002_s7 = inlined_call_operand.hbm [shape: f32[256,2], index: 7, kind: input, shape index: {}]   ;;  %s2003_s8 = inlined_call_operand.hbm [shape: f32[2,256], index: 8, kind: input, shape index: {}]   ;;  %s2004_s9 = inlined_call_operand.hbm [shape: f32[16,256], index: 9, kind: output, shape index: {}]  }
   0x1   :  { %15 = vsyncpa [#allocation6], 0 }
   0x2   :  { %16 = vsyncpa [#allocation9], 0 }
   0x3   :  { %17 = vsyncpa [#allocation12], 0 }
   0x4   :  { %18 = vsyncpa [#allocation15], 0 }
   0x5   :  { %19 = vsyncpa [#allocation4], 0  ;;  %s1645_s30 = smov [#allocation5]   ;;  %s1413_s13 = scalar_lea.hbm %s1996_s1, 1024 }
   0x6   :  { %s35_s10 = sshll.u32 %s1645_s30, 4  ;;  %p1414_p0 = scmp.ne.s32.totalorder %s1996_s1, %s1413_s13  ;;  %s36_s10 = int_to_ptr.vmem [resolvable:$true] %s35_s10 }
   0x7   :  { %p1417_p1 = scmp.lt.u32.totalorder %s1413_s13, %s1996_s1 }
   0x9   :  { %p1419_p2 = pnand %p1417_p1, %p1414_p0 }
   0xb   :  { %1422 = shalt.err (!%p1419_p2)
}
   0xc   :  { %s1423_s18 = scalar_lea.vmem %s36_s10, 1024  ;;  %p1428_p4 = scmp.lt.s32.totalorder %s36_s10, %s36_s10 }
   0xd   :  { %p1424_p3 = scmp.ne.s32.totalorder %s36_s10, %s1423_s18  ;;  %p1429_p5 = scmp.lt.s32.totalorder %s1423_s18, %s1423_s18 }
   0xf   :  { %p1430_p6 = por %p1429_p5, %p1428_p4 }
  0x11   :  { %p1431_p7 = pnand %p1430_p6, %p1424_p3 }
  0x13   :  { %1434 = shalt.err (!%p1431_p7)
}
  0x14   :  { %s1646_s19 = smov 128   ;;  %s1647_s20 = smov 8  }
  0x15   :  { %41 = dma.hbm_to_vmem [thread:$0]  %s1996_s1, 1024, %s36_s10, [#allocation6], %s1646_s19, %s1646_s19, %s1647_s20  }
  0x16   :  { %s1648_s23 = smov [#allocation8]   ;;  %s1649_s25 = smov [#allocation11]  }
  0x17   :  { %s59_s24 = sshll.u32 %s1648_s23, 4  ;;  %s81_s26 = sshll.u32 %s1649_s25, 4  ;;  %s60_s24 = int_to_ptr.vmem [resolvable:$true] %s59_s24  ;;  %s82_s26 = int_to_ptr.vmem [resolvable:$true] %s81_s26 }
  0x18   :  { %s1435_s29 = scalar_lea.hbm %s1998_s3, 256 }
  0x19   :  { %p1436_p8 = scmp.ne.s32.totalorder %s1998_s3, %s1435_s29  ;;  %p1439_p9 = scmp.lt.u32.totalorder %s1435_s29, %s1998_s3 }
  0x1b   :  { %p1441_p10 = pnand %p1439_p9, %p1436_p8 }
  0x1d   :  { %1444 = shalt.err (!%p1441_p10)
}
  0x1e   :  { %s1445_s1 = scalar_lea.vmem %s60_s24, 256  ;;  %p1450_p12 = scmp.lt.s32.totalorder %s60_s24, %s60_s24 }
  0x1f   :  { %p1446_p11 = scmp.ne.s32.totalorder %s60_s24, %s1445_s1  ;;  %p1451_p13 = scmp.lt.s32.totalorder %s1445_s1, %s1445_s1 }
  0x21   :  { %p1452_p0 = por %p1451_p13, %p1450_p12 }
  0x23   :  { %p1453_p1 = pnand %p1452_p0, %p1446_p11 }
  0x25   :  { %1456 = shalt.err (!%p1453_p1)
}
  0x26   :  { %65 = dma.hbm_to_vmem [thread:$0]  %s1998_s3, 256, %s60_s24, [#allocation9], %s1646_s19, %s1646_s19, %s1647_s20  }
  0x27   :  { %s1457_s17 = scalar_lea.hbm %s2000_s5, 256 }
  0x28   :  { %p1458_p2 = scmp.ne.s32.totalorder %s2000_s5, %s1457_s17  ;;  %p1461_p3 = scmp.lt.u32.totalorder %s1457_s17, %s2000_s5 }
  0x2a   :  { %p1463_p4 = pnand %p1461_p3, %p1458_p2 }
  0x2c   :  { %1466 = shalt.err (!%p1463_p4)
}
  0x2d   :  { %s1467_s25 = scalar_lea.vmem %s82_s26, 256  ;;  %p1472_p6 = scmp.lt.s32.totalorder %s82_s26, %s82_s26 }
  0x2e   :  { %p1468_p5 = scmp.ne.s32.totalorder %s82_s26, %s1467_s25  ;;  %p1473_p7 = scmp.lt.s32.totalorder %s1467_s25, %s1467_s25 }
  0x30   :  { %p1474_p8 = por %p1473_p7, %p1472_p6 }
  0x32   :  { %p1475_p9 = pnand %p1474_p8, %p1468_p5 }
  0x34   :  { %1478 = shalt.err (!%p1475_p9)
}
  0x35   :  { %87 = dma.hbm_to_vmem [thread:$0]  %s2000_s5, 256, %s82_s26, [#allocation12], %s1646_s19, %s1646_s19, %s1647_s20  }
  0x36   :  { %s1650_s27 = smov [#allocation14]   ;;  %s1651_s29 = smov [#allocation2]  }
  0x37   :  { %s103_s28 = sshll.u32 %s1650_s27, 4  ;;  %s26_s30 = sshll.u32 %s1651_s29, 4  ;;  %s104_s28 = int_to_ptr.vmem [resolvable:$true] %s103_s28  ;;  %s27_s30 = int_to_ptr.vmem [resolvable:$true] %s26_s30 }
  0x38   :  { %s1479_s13 = scalar_lea.hbm %s2002_s7, 4096 }
  0x39   :  { %p1480_p10 = scmp.ne.s32.totalorder %s2002_s7, %s1479_s13  ;;  %p1483_p11 = scmp.lt.u32.totalorder %s1479_s13, %s2002_s7 }
  0x3b   :  { %p1485_p12 = pnand %p1483_p11, %p1480_p10 }
  0x3d   :  { %1488 = shalt.err (!%p1485_p12)
}
  0x3e   :  { %s1489_s5 = scalar_lea.vmem %s104_s28, 4096  ;;  %p1494_p0 = scmp.lt.s32.totalorder %s104_s28, %s104_s28 }
  0x3f   :  { %p1490_p13 = scmp.ne.s32.totalorder %s104_s28, %s1489_s5  ;;  %p1495_p1 = scmp.lt.s32.totalorder %s1489_s5, %s1489_s5 }
  0x41   :  { %p1496_p2 = por %p1495_p1, %p1494_p0 }
  0x43   :  { %p1497_p3 = pnand %p1496_p2, %p1490_p13 }
  0x45   :  { %1500 = shalt.err (!%p1497_p3)
}
  0x46   :  { %109 = dma.hbm_to_vmem [thread:$0]  %s2002_s7, 4096, %s104_s28, [#allocation15], %s1646_s19, %s1646_s19, %s1647_s20  }
  0x47   :  { %s1501_s21 = scalar_lea.hbm %s1995_s0, 256 }
  0x48   :  { %p1502_p4 = scmp.ne.s32.totalorder %s1995_s0, %s1501_s21  ;;  %p1505_p5 = scmp.lt.u32.totalorder %s1501_s21, %s1995_s0 }
  0x4a   :  { %p1507_p6 = pnand %p1505_p5, %p1502_p4 }
  0x4c   :  { %1510 = shalt.err (!%p1507_p6)
}
  0x4d   :  { %s1511_s24 = scalar_lea.vmem %s27_s30, 256  ;;  %p1516_p8 = scmp.lt.s32.totalorder %s27_s30, %s27_s30 }
  0x4e   :  { %p1512_p7 = scmp.ne.s32.totalorder %s27_s30, %s1511_s24  ;;  %p1517_p9 = scmp.lt.s32.totalorder %s1511_s24, %s1511_s24 }
  0x50   :  { %p1518_p10 = por %p1517_p9, %p1516_p8 }
  0x52   :  { %p1519_p11 = pnand %p1518_p10, %p1512_p7 }
  0x54   :  { %1522 = shalt.err (!%p1519_p11)
}
  0x55   :  { %29 = dma.hbm_to_vmem [thread:$0]  %s1995_s0, 256, %s27_s30, [#allocation3]  }
  0x56   :  { %s1652_s28 = smov [#allocation7]   ;;  %s1653_s11 = smov [#allocation10]  }
  0x57   :  { %s47_s29 = sshll.u32 %s1652_s28, 4  ;;  %s72_s12 = sshll.u32 %s1653_s11, 4  ;;  %s48_s29 = int_to_ptr.vmem [resolvable:$true] %s47_s29  ;;  %s73_s12 = int_to_ptr.vmem [resolvable:$true] %s72_s12 }
  0x58   :  { %s1523_s10 = scalar_lea.hbm %s1997_s2, 768 }
  0x59   :  { %p1524_p12 = scmp.ne.s32.totalorder %s1997_s2, %s1523_s10  ;;  %p1527_p13 = scmp.lt.u32.totalorder %s1523_s10, %s1997_s2 }
  0x5b   :  { %p1529_p0 = pnand %p1527_p13, %p1524_p12 }
  0x5d   :  { %1532 = shalt.err (!%p1529_p0)
}
  0x5e   :  { %s1533_s0 = scalar_lea.vmem %s48_s29, 768  ;;  %p1538_p2 = scmp.lt.s32.totalorder %s48_s29, %s48_s29 }
  0x5f   :  { %p1534_p1 = scmp.ne.s32.totalorder %s48_s29, %s1533_s0  ;;  %p1539_p3 = scmp.lt.s32.totalorder %s1533_s0, %s1533_s0 }
  0x61   :  { %p1540_p4 = por %p1539_p3, %p1538_p2 }
  0x63   :  { %p1541_p5 = pnand %p1540_p4, %p1534_p1 }
  0x65   :  { %1544 = shalt.err (!%p1541_p5)
}
  0x66   :  { %53 = dma.hbm_to_vmem [thread:$0]  %s1997_s2, 768, %s48_s29, [#allocation6], %s1646_s19, %s1646_s19, %s1647_s20  }
  0x67   :  { %s1545_s21 = scalar_lea.hbm %s1999_s4, 64 }
  0x68   :  { %p1546_p6 = scmp.ne.s32.totalorder %s1999_s4, %s1545_s21  ;;  %p1549_p7 = scmp.lt.u32.totalorder %s1545_s21, %s1999_s4 }
  0x6a   :  { %p1551_p8 = pnand %p1549_p7, %p1546_p6 }
  0x6c   :  { %1554 = shalt.err (!%p1551_p8)
}
  0x6d   :  { %s1555_s24 = scalar_lea.vmem %s73_s12, 64  ;;  %p1560_p10 = scmp.lt.s32.totalorder %s73_s12, %s73_s12 }
  0x6e   :  { %p1556_p9 = scmp.ne.s32.totalorder %s73_s12, %s1555_s24  ;;  %p1561_p11 = scmp.lt.s32.totalorder %s1555_s24, %s1555_s24 }
  0x70   :  { %p1562_p12 = por %p1561_p11, %p1560_p10 }
  0x72   :  { %p1563_p13 = pnand %p1562_p12, %p1556_p9 }
  0x74   :  { %1566 = shalt.err (!%p1563_p13)
}
  0x75   :  { %75 = dma.hbm_to_vmem [thread:$0]  %s1999_s4, 64, %s73_s12, [#allocation9]  }
  0x76   :  { %s1654_s20 = smov [#allocation13]   ;;  %s1655_s27 = smov [#allocation16]  }
  0x77   :  { %s94_s7 = sshll.u32 %s1654_s20, 4  ;;  %s116_s28 = sshll.u32 %s1655_s27, 4  ;;  %s95_s7 = int_to_ptr.vmem [resolvable:$true] %s94_s7  ;;  %s117_s28 = int_to_ptr.vmem [resolvable:$true] %s116_s28 }
  0x78   :  { %s1567_s13 = scalar_lea.hbm %s2001_s6, 128 }
  0x79   :  { %p1568_p0 = scmp.ne.s32.totalorder %s2001_s6, %s1567_s13  ;;  %p1571_p1 = scmp.lt.u32.totalorder %s1567_s13, %s2001_s6 }
  0x7b   :  { %p1573_p2 = pnand %p1571_p1, %p1568_p0 }
  0x7d   :  { %1576 = shalt.err (!%p1573_p2)
}
  0x7e   :  { %s1577_s4 = scalar_lea.vmem %s95_s7, 128  ;;  %p1582_p4 = scmp.lt.s32.totalorder %s95_s7, %s95_s7 }
  0x7f   :  { %p1578_p3 = scmp.ne.s32.totalorder %s95_s7, %s1577_s4  ;;  %p1583_p5 = scmp.lt.s32.totalorder %s1577_s4, %s1577_s4 }
  0x81   :  { %p1584_p6 = por %p1583_p5, %p1582_p4 }
  0x83   :  { %p1585_p7 = pnand %p1584_p6, %p1578_p3 }
  0x85   :  { %1588 = shalt.err (!%p1585_p7)
}
  0x86   :  { %97 = dma.hbm_to_vmem [thread:$0]  %s2001_s6, 128, %s95_s7, [#allocation12]  }
  0x87   :  { %s1589_s30 = scalar_lea.hbm %s2003_s8, 64 }
  0x88   :  { %p1590_p8 = scmp.ne.s32.totalorder %s2003_s8, %s1589_s30  ;;  %p1593_p9 = scmp.lt.u32.totalorder %s1589_s30, %s2003_s8 }
  0x8a   :  { %p1595_p10 = pnand %p1593_p9, %p1590_p8 }
  0x8c   :  { %1598 = shalt.err (!%p1595_p10)
}
  0x8d   :  { %s1599_s22 = scalar_lea.vmem %s117_s28, 64  ;;  %p1604_p12 = scmp.lt.s32.totalorder %s117_s28, %s117_s28 }
  0x8e   :  { %p1600_p11 = scmp.ne.s32.totalorder %s117_s28, %s1599_s22  ;;  %p1605_p13 = scmp.lt.s32.totalorder %s1599_s22, %s1599_s22 }
  0x90   :  { %p1606_p0 = por %p1605_p13, %p1604_p12 }
  0x92   :  { %p1607_p1 = pnand %p1606_p0, %p1600_p11 }
  0x94   :  { %1610 = shalt.err (!%p1607_p1)
}
  0x95   :  { %119 = dma.hbm_to_vmem [thread:$0]  %s2003_s8, 64, %s117_s28, [#allocation15]  }
  0x96   :  { %1633 = dma.done.wait [#allocation3], 256  }
  0x97   :  { %1634 = vsyncadd [#allocation3], 4294967040 }
  0x98   :  { %1635 = dma.done.wait [#allocation6], 1792  }
  0x99   :  { %1636 = vsyncadd [#allocation6], 4294965504 }
  0x9a   :  { %1637 = dma.done.wait [#allocation9], 320  }
  0x9b   :  { %1638 = vsyncadd [#allocation9], 4294966976 }
  0x9c   :  { %1639 = dma.done.wait [#allocation12], 384  }
  0x9d   :  { %1640 = vsyncadd [#allocation12], 4294966912 }
  0x9e   :  { %1641 = dma.done.wait [#allocation15], 4160  }
  0x9f   :  { %1642 = vsyncadd [#allocation15], 4294963136  ;;  %v1656_v0 = vmov 0.0   ;;  %v147_v1 = vld [vmem:[#allocation2] sm:$0xff]  ;;  %s1657_s25 = smov 2   ;;  %v148_v2 = vld [vmem:[#allocation2 + $0x8] sm:$0xff]  ;;  %v277_v10 = vlaneseq }
  0xa0   :  { %230 = vmatprep.mubr.f32.mxu0 %v1656_v0  ;;  %607 = vmatprep.mubr.f32.mxu1 %v1656_v0  ;;  %s1658_s8 = smov 1   ;;  %v149_v3 = vld [vmem:[#allocation5 + $0x20] sm:$0xff]  ;;  %vm153_vm0 = vcmask 64512   ;;  %v150_v4 = vld [vmem:[#allocation5 + $0x28] sm:$0xff]  ;;  %v151_v5 = vld [vmem:[#allocation5 + $0x30] sm:$0xff]  ;;  %v1659_v8 = vmov 0  }
  0xa1   :  { %273 = vrot.lane.b32.xlu0 %v147_v1, %s1657_s25  ;;  %385 = vrot.lane.b32.xlu1 %v147_v1, %s1658_s8  ;;  %v1850_v6 = vld [vmem:[#allocation8] sm:$0xff]  ;;  %v1852_v7 = vld [vmem:[#allocation8 + $0x8] sm:$0xff]  ;;  %v285_v11 = vshrl.u32 %v277_v10, 7  ;;  %v1860_v12 = vand.u32 127, %v277_v10  ;;  %v271_v32 = vld [vmem:[#allocation5] sm:$0xff]  ;;  %v1660_v41 = vmov 1  }
  0xa2   :  { %166 = vmatprep.subr.mxu0 %v148_v2  ;;  %1400 = vset.pattern.permute.xlu0 %v1659_v8  ;;  %v152_v9 = vld [vmem:[#allocation5 + $0x38] sm:$0xff]  ;;  %v272_v34 = vld [vmem:[#allocation5 + $0x8] sm:$0xff]  ;;  %v383_v35 = vld [vmem:[#allocation5 + $0x10] sm:$0xff]  ;;  %v1661_v58 = vmov 2   ;;  %vm530_vm3 = vcmask 130048   ;;  %vm1663_vm4 = vmmov 0  }
  0xa3   :  { %167 = vmatpush1.msra.mxu0 %v147_v1  ;;  %1401 = vset.pattern.permute.xlu1 %v1659_v8  ;;  %v286_v13 = vsub.s32 0, %v285_v11  ;;  %v290_v14 = vsub.s32 1, %v285_v11  ;;  %v282_v15 = vld [vmem:[#allocation13] ss:$4 sm:$0x3]  ;;  %vm279_vm1 = vcmp.lt.s32.totalorder %v1860_v12, 2 }
  0xa4   :  { %1232 = vmatmul.mubr.msk.f32.vlgmr.msra.gmra.mrb[0].mxu0 %vm153_vm0, %v149_v3  ;;  %v393_v16 = vld [vmem:[#allocation13 + $0x1] ss:$4 sm:$0x3]  ;;  %vm389_vm2 = vcmp.lt.s32.totalorder %v1860_v12, 1  ;;  %vm1002_vm5 = vcmask 31744   ;;  %vm1009_vm6 = vcmask 1043456  }
  0xa5   :  { %275 = vrot.lane.b32.xlu0 %v148_v2, %s1657_s25  ;;  %387 = vrot.lane.b32.xlu1 %v148_v2, %s1658_s8  ;;  %v1863_v19 = vrot.slane %v282_v15, %v286_v13  ;;  %v1865_v20 = vrot.slane %v282_v15, %v290_v14  ;;  %v1868_v21 = vrot.slane %v393_v16, %v290_v14  ;;  %v384_v36 = vld [vmem:[#allocation5 + $0x18] sm:$0xff]  ;;  %vm1117_vm7 = vcmask 1041408   ;;  %s1664_s3 = smov [#allocation17]  }
  0xa6   :  { %236 = vmatprep.mubr.f32.mxu0 %v1656_v0  ;;  %v1870_v22 = vrot.slane %v393_v16, %v286_v13  ;;  %v513_v16 = vld [vmem:[#allocation7 + $0x8] sm:$0xff]  ;;  %vm1110_vm8 = vcmask 15360   ;;  %s1216_s24 = sshll.u32 %s1664_s3, 4  ;;  %s1217_s24 = int_to_ptr.vmem [resolvable:$true] %s1216_s24 }
  0xa7   :  { %s1611_s2 = scalar_lea.vmem %s1217_s24, 512  ;;  %p1616_p3 = scmp.lt.s32.totalorder %s1217_s24, %s1217_s24 }
  0xa8   :  { %1233 = vmatmul.mubr.msk.f32.gmra.mrb[2].mxu0 %vm153_vm0, %v150_v4  ;;  %p1612_p2 = scmp.ne.s32.totalorder %s1217_s24, %s1611_s2  ;;  %p1617_p4 = scmp.lt.s32.totalorder %s1611_s2, %s1611_s2 }
  0xa9   :  { %242 = vmatprep.mubr.f32.mxu0 %v1656_v0  ;;  %495 = vperm.xlu0 %1400, %v1850_v6  }
  0xaa   :  { %499 = vperm.xlu1 %1401, %v1852_v7   ;;  %p1618_p5 = por %p1617_p4, %p1616_p3 }
  0xac   :  { %1234 = vmatmul.mubr.msk.f32.gmra.mrb[4].mxu0 %vm153_vm0, %v151_v5  ;;  %p1619_p6 = pnand %p1618_p5, %p1612_p2 }
  0xad   :  { %248 = vmatprep.mubr.f32.mxu0 %v1656_v0  ;;  %1403 = vset.pattern.permute.xlu0 %v1660_v41 }
  0xae   :  { %1402 = vset.pattern.permute.xlu1 %v1660_v41 }
  0xb0   :  { %1235 = vmatmul.mubr.msk.f32.gmra.mrb[6].mxu0 %vm153_vm0, %v152_v9 }
  0xb1   :  { %366 = vmatprep.mubr.f32.mxu0 %v1656_v0 }
 0x113   :  { %v274_v17 = vpop.permute.xlu0 %273  ;;  %v386_v18 = vpop.permute.xlu1 %385 }
 0x117   :  { %v276_v23 = vpop.permute.xlu0 %275  ;;  %v388_v24 = vpop.permute.xlu1 %387 }
 0x118   :  { %v280_v25 = vsel %vm279_vm1, %v274_v17, %v276_v23  ;;  %v281_v26 = vsel %vm279_vm1, %v276_v23, %v274_v17  ;;  %v390_v27 = vsel %vm389_vm2, %v386_v18, %v388_v24  ;;  %v391_v28 = vsel %vm389_vm2, %v388_v24, %v386_v18  ;;  %v512_v17 = vld [vmem:[#allocation7] sm:$0xff] }
 0x119   :  { %v294_v29 = vmul.f32 %v1863_v19, %v281_v26  ;;  %v295_v30 = vmul.f32 %v1865_v20, %v280_v25  ;;  %v406_v31 = vmul.f32 %v1868_v21, %v390_v27  ;;  %v405_v33 = vmul.f32 %v1870_v22, %v391_v28  ;;  %v834_v24 = vld [vmem:[#allocation14 + $0x80] sm:$0xff]  ;;  %v835_v25 = vld [vmem:[#allocation14 + $0x88] sm:$0xff] }
 0x11a   :  { %v1325_v12 = vpack.c.bf16 %v835_v25, %v834_v24 }
 0x11b   :  { %302 = vmatprep.subr.mxu0 %v295_v30 }
 0x11c   :  { %303 = vmatpush1.msra.mxu0 %v294_v29  ;;  %v510_v29 = vld [vmem:[#allocation7 + $0x20] sm:$0xff] }
 0x11d   :  { %1236 = vmatmul.mubr.msk.f32.vlgmr.msra.gmra.mrb[0].mxu0 %vm153_vm0, %v271_v32  ;;  %413 = vmatprep.subr.mxu0 %v406_v31  ;;  %v819_v32 = vld [vmem:[#allocation14 + $0x8] sm:$0xff] }
 0x11e   :  { %372 = vmatprep.mubr.f32.mxu0 %v1656_v0  ;;  %414 = vmatpush1.msra.mxu0 %v405_v33  ;;  %v836_v33 = vld [vmem:[#allocation14 + $0x90] sm:$0xff] }
 0x121   :  { %1237 = vmatmul.mubr.msk.f32.gmra.mrb[2].mxu0 %vm153_vm0, %v272_v34  ;;  %v837_v34 = vld [vmem:[#allocation14 + $0x98] sm:$0xff] }
 0x122   :  { %477 = vmatprep.mubr.f32.mxu0 %v1656_v0  ;;  %v1329_v41 = vpack.c.bf16 %v837_v34, %v836_v33 }
 0x125   :  { %1238 = vmatmul.mubr.msk.f32.vlgmr.msra.gmra.mrb[0].mxu0 %vm153_vm0, %v383_v35  ;;  %v697_v35 = vld [vmem:[#allocation7 + $0x10] sm:$0xff] }
 0x126   :  { %483 = vmatprep.mubr.f32.mxu0 %v1656_v0 }
 0x128   :  { %v496_v42 = vpop.permute.xlu0 %495 }
 0x129   :  { %1239 = vmatmul.mubr.msk.f32.gmra.mrb[2].mxu0 %vm153_vm0, %v384_v36  ;;  %v500_v46 = vpop.permute.xlu1 %499 }
 0x12a   :  { %601 = vmatprep.mubr.f32.mxu0 %v1656_v0 }
 0x17f   :  { %v1892_v37 = vpop.f32.mrb[4].mxu0 }
 0x180   :  { %v1894_v38 = vpop.f32.mrb[5].mxu0 }
 0x183   :  { %v1896_v39 = vpop.f32.mrb[6].mxu0 }
 0x184   :  { %v1898_v40 = vpop.f32.mrb[7].mxu0 }
 0x1f8   :  { %v479_v43 = vpop.f32.mrb[0].mxu0 }
 0x1f9   :  { %v502_v44 = vadd.f32 %v496_v42, %v479_v43  ;;  %v481_v45 = vpop.f32.mrb[1].mxu0  ;;  %v821_v43 = vld [vmem:[#allocation14 + $0x18] sm:$0xff] }
 0x1fa   :  { %v503_v48 = vadd.f32 %v496_v42, %v481_v45  ;;  %v820_v42 = vld [vmem:[#allocation14 + $0x10] sm:$0xff]  ;;  %v839_v45 = vld [vmem:[#allocation14 + $0xa8] sm:$0xff] }
 0x1fb   :  { %v1900_v47 = vmax.f32 %v502_v44, 0.0  ;;  %v838_v44 = vld [vmem:[#allocation14 + $0xa0] sm:$0xff] }
 0x1fc   :  { %v485_v49 = vpop.f32.mrb[2].mxu0  ;;  %v507_v53 = vmax.f32 %v503_v48, 0.0  ;;  %v1333_v48 = vpack.c.bf16 %v839_v45, %v838_v44 }
 0x1fd   :  { %v504_v50 = vadd.f32 %v500_v46, %v485_v49  ;;  %514 = vrot.lane.b32.xlu1 %v1900_v47, %s1657_s25  ;;  %v487_v51 = vpop.f32.mrb[3].mxu0  ;;  %v822_v49 = vld [vmem:[#allocation14 + $0x20] sm:$0xff] }
 0x1fe   :  { %v505_v52 = vadd.f32 %v500_v46, %v487_v51  ;;  %v698_v46 = vld [vmem:[#allocation7 + $0x18] sm:$0xff]  ;;  %v840_v51 = vld [vmem:[#allocation14 + $0xb0] sm:$0xff] }
 0x1ff   :  { %v508_v54 = vmax.f32 %v504_v50, 0.0  ;;  %v823_v50 = vld [vmem:[#allocation14 + $0x28] sm:$0xff] }
 0x200   :  { %v509_v55 = vmax.f32 %v505_v52, 0.0  ;;  %v841_v52 = vld [vmem:[#allocation14 + $0xb8] sm:$0xff] }
 0x201   :  { %v1319_v56 = vpack.c.bf16 %v508_v54, %v1900_v47  ;;  %518 = vrot.lane.b32.xlu1 %v507_v53, %s1657_s25  ;;  %516 = vrot.lane.b32.xlu0 %v508_v54, %s1657_s25 }
 0x202   :  { %v1317_v57 = vpack.c.bf16 %v509_v55, %v507_v53 }
 0x205   :  { %699 = vrot.lane.b32.xlu1 %v1900_v47, %s1658_s8  ;;  %520 = vrot.lane.b32.xlu0 %v509_v55, %s1657_s25  ;;  %v1331_v47 = vpack.c.bf16 %v821_v43, %v820_v42 }
 0x209   :  { %703 = vrot.lane.b32.xlu1 %v507_v53, %s1658_s8  ;;  %701 = vrot.lane.b32.xlu0 %v508_v54, %s1658_s8  ;;  %v1335_v53 = vpack.c.bf16 %v823_v50, %v822_v49  ;;  %v1337_v54 = vpack.c.bf16 %v841_v52, %v840_v51  ;;  %v925_v49 = vld [vmem:[#allocation10] sm:$0xf]  ;;  %v1000_v50 = vld [vmem:[#allocation11] sm:$0xff] }
 0x20d   :  { %803 = vperm.xlu1 %1402, %v1850_v6   ;;  %705 = vrot.lane.b32.xlu0 %v509_v55, %s1658_s8  ;;  %v824_v55 = vld [vmem:[#allocation14 + $0x30] sm:$0xff] }
 0x211   :  { %1404 = vset.pattern.permute.xlu1 %v1661_v58  ;;  %807 = vperm.xlu0 %1403, %v1852_v7   ;;  %v843_v58 = vld [vmem:[#allocation14 + $0xc8] sm:$0xff] }
 0x212   :  { %259 = vperm.xlu1 %1404, %v1850_v6  }
 0x216   :  { %264 = vperm.xlu1 %1404, %v1852_v7  }
 0x26f   :  { %v515_v59 = vpop.permute.xlu1 %514 }
 0x273   :  { %v519_v60 = vpop.permute.xlu1 %518  ;;  %v517_v61 = vpop.permute.xlu0 %516 }
 0x274   :  { %v522_v62 = vsel %vm279_vm1, %v515_v59, %v519_v60  ;;  %v524_v63 = vsel %vm279_vm1, %v519_v60, %v515_v59 }
 0x275   :  { %v526_v5 = vmul.f32 %v524_v63, %v1863_v19  ;;  %v527_v6 = vmul.f32 %v522_v62, %v1865_v20  ;;  %v827_v62 = vld [vmem:[#allocation14 + $0x48] sm:$0xff]  ;;  %v844_v63 = vld [vmem:[#allocation14 + $0xd0] sm:$0xff] }
 0x277   :  { %v700_v1 = vpop.permute.xlu1 %699  ;;  %v521_v2 = vpop.permute.xlu0 %520 }
 0x278   :  { %v523_v3 = vsel %vm279_vm1, %v517_v61, %v521_v2  ;;  %v525_v4 = vsel %vm279_vm1, %v521_v2, %v517_v61  ;;  %v826_v61 = vld [vmem:[#allocation14 + $0x40] sm:$0xff] }
 0x279   :  { %v528_v7 = vmul.f32 %v525_v4, %v1863_v19  ;;  %v529_v8 = vmul.f32 %v523_v3, %v1865_v20  ;;  %v1343_v2 = vpack.c.bf16 %v827_v62, %v826_v61  ;;  %v828_v4 = vld [vmem:[#allocation14 + $0x50] sm:$0xff] }
 0x27b   :  { %v1315_v9 = vpack.c.bf16 %v528_v7, %v526_v5  ;;  %v704_v10 = vpop.permute.xlu1 %703  ;;  %v702_v11 = vpop.permute.xlu0 %701  ;;  %v1313_v13 = vpack.c.bf16 %v529_v8, %v527_v6  ;;  %v829_v5 = vld [vmem:[#allocation14 + $0x58] sm:$0xff]  ;;  %v846_v7 = vld [vmem:[#allocation14 + $0xe0] sm:$0xff]  ;;  %v847_v8 = vld [vmem:[#allocation14 + $0xe8] sm:$0xff] }
 0x27c   :  { %v709_v14 = vsel %vm389_vm2, %v704_v10, %v700_v1  ;;  %v707_v15 = vsel %vm389_vm2, %v700_v1, %v704_v10  ;;  %v845_v1 = vld [vmem:[#allocation14 + $0xd8] sm:$0xff]  ;;  %v1347_v6 = vpack.c.bf16 %v829_v5, %v828_v4  ;;  %v830_v10 = vld [vmem:[#allocation14 + $0x60] sm:$0xff] }
 0x27d   :  { %1314 = vmatprep.subr.bf16.mxu0 %v1313_v13  ;;  %1360 = vmatprep.subr.bf16.mxu1 %v1313_v13  ;;  %v711_v19 = vmul.f32 %v709_v14, %v1870_v22  ;;  %v712_v26 = vmul.f32 %v707_v15, %v1868_v21  ;;  %v1345_v3 = vpack.c.bf16 %v845_v1, %v844_v63  ;;  %v848_v14 = vld [vmem:[#allocation14 + $0xf0] sm:$0xff]  ;;  %v849_v15 = vld [vmem:[#allocation14 + $0xf8] sm:$0xff] }
 0x27e   :  { %1316 = vmatpush1.bf16.msra.mxu0 %v1315_v9  ;;  %1361 = vmatpush1.bf16.msra.mxu1 %v1315_v9  ;;  %v1349_v9 = vpack.c.bf16 %v847_v8, %v846_v7 }
 0x27f   :  { %v706_v18 = vpop.permute.xlu0 %705  ;;  %1318 = vmatprep.subr.bf16.mxu1 %v1317_v57  ;;  %v842_v57 = vld [vmem:[#allocation14 + $0xc0] sm:$0xff] }
 0x280   :  { %v708_v20 = vsel %vm389_vm2, %v702_v11, %v706_v18  ;;  %v710_v23 = vsel %vm389_vm2, %v706_v18, %v702_v11  ;;  %v1341_v60 = vpack.c.bf16 %v843_v58, %v842_v57  ;;  %v831_v11 = vld [vmem:[#allocation14 + $0x68] sm:$0xff]  ;;  %v833_v18 = vld [vmem:[#allocation14 + $0x78] sm:$0xff] }
 0x281   :  { %v713_v27 = vmul.f32 %v710_v23, %v1870_v22  ;;  %v714_v28 = vmul.f32 %v708_v20, %v1868_v21  ;;  %1241 = vmatmul.mubr.msk.f32.vlgmr.msra.gmra.mrb[0].mxu1 %vm530_vm3, %v513_v16  ;;  %1240 = vmatmul.mubr.msk.f32.vlgmr.msra.gmra.mrb[8].mxu0 %vm530_vm3, %v512_v17  ;;  %v511_v22 = vld [vmem:[#allocation7 + $0x28] sm:$0xff]  ;;  %v818_v21 = vld [vmem:[#allocation14] sm:$0xff]  ;;  %v1351_v13 = vpack.c.bf16 %v831_v11, %v830_v10 }
 0x282   :  { %1320 = vmatpush1.bf16.msra.mxu1 %v1319_v56  ;;  %684 = vmatprep.mubr.f32.mxu1 %v1656_v0  ;;  %v1327_v36 = vpack.c.bf16 %v819_v32, %v818_v21  ;;  %v825_v56 = vld [vmem:[#allocation14 + $0x38] sm:$0xff]  ;;  %v1353_v16 = vpack.c.bf16 %v849_v15, %v848_v14  ;;  %v832_v17 = vld [vmem:[#allocation14 + $0x70] sm:$0xff] }
 0x283   :  { %v1323_v30 = vpack.c.bf16 %v713_v27, %v711_v19  ;;  %v1321_v31 = vpack.c.bf16 %v714_v28, %v712_v26  ;;  %v1339_v59 = vpack.c.bf16 %v825_v56, %v824_v55  ;;  %v1355_v19 = vpack.c.bf16 %v833_v18, %v832_v17  ;;  %1305 = vmatprep.mubr.msk.f32.mxu0 %vm1663_vm4, %v1656_v0  ;;  %v1252_v55 = vld.sshfl [vmem:[#allocation16] sm:$0x33 pattern:$0x76325410] }
 0x284   :  { %v1109_v56 = vcombine.high %v1252_v55, %v1252_v55 }
 0x285   :  { %1242 = vmatmul.mubr.msk.f32.vlgmr.msra.gmra.mrb[2].mxu1 %vm530_vm3, %v510_v29  ;;  %1322 = vmatprep.subr.bf16.mxu1 %v1321_v31 }
 0x286   :  { %1324 = vmatpush1.bf16.msra.mxu1 %v1323_v30  ;;  %690 = vmatprep.mubr.f32.mxu1 %v1656_v0 }
 0x287   :  { %1326 = vmatprep.subr.bf16.mxu1 %v1325_v12 }
 0x289   :  { %1243 = vmatmul.mubr.msk.f32.gmra.mrb[0].mxu1 %vm530_vm3, %v511_v22 }
 0x28a   :  { %785 = vmatprep.mubr.f32.mxu1 %v1656_v0 }
 0x28c   :  { %v804_v27 = vpop.permute.xlu1 %803 }
 0x28d   :  { %1244 = vmatmul.mubr.msk.f32.vlgmr.msra.gmra.mrb[2].mxu1 %vm530_vm3, %v697_v35 }
 0x28e   :  { %791 = vmatprep.mubr.f32.mxu1 %v1656_v0  ;;  %1328 = vmatpush3.bf16.msra.mxu1 %v1327_v36 }
 0x28f   :  { %1330 = vmatprep.subr.bf16.mxu1 %v1329_v41  ;;  %v1662_v41 = vmov 0.0|0.0  }
 0x290   :  { %v808_v30 = vpop.permute.xlu0 %807  ;;  %1357 = vmatprep.subr.bf16.mxu0 %v1662_v41 }
 0x291   :  { %1245 = vmatmul.mubr.msk.f32.gmra.mrb[0].mxu1 %vm530_vm3, %v698_v46  ;;  %v260_v4 = vpop.permute.xlu1 %259 }
 0x292   :  { %1332 = vmatpush3.bf16.msra.mxu1 %v1331_v47 }
 0x293   :  { %1334 = vmatprep.subr.bf16.mxu1 %v1333_v48 }
 0x295   :  { %v265_v10 = vpop.permute.xlu1 %264 }
 0x296   :  { %1336 = vmatpush3.bf16.msra.mxu1 %v1335_v53  ;;  %v270_v17 = vadd.f32 %v265_v10, %v1898_v40 }
 0x297   :  { %1338 = vmatprep.subr.bf16.mxu1 %v1337_v54  ;;  %v1001_v54 = vld [vmem:[#allocation11 + $0x8] sm:$0xff] }
 0x29a   :  { %1340 = vmatpush3.bf16.msra.mxu1 %v1339_v59 }
 0x29b   :  { %1342 = vmatprep.subr.bf16.mxu1 %v1341_v60 }
 0x29e   :  { %1344 = vmatpush3.bf16.msra.mxu1 %v1343_v2 }
 0x29f   :  { %1346 = vmatprep.subr.bf16.mxu1 %v1345_v3 }
 0x2a2   :  { %1348 = vmatpush3.bf16.msra.mxu1 %v1347_v6  ;;  %v267_v6 = vadd.f32 %v260_v4, %v1892_v37 }
 0x2a3   :  { %1350 = vmatprep.subr.bf16.mxu1 %v1349_v9  ;;  %v268_v9 = vadd.f32 %v260_v4, %v1894_v38 }
 0x2a6   :  { %1352 = vmatpush3.bf16.msra.mxu1 %v1351_v13 }
 0x2a7   :  { %1354 = vmatprep.subr.bf16.mxu1 %v1353_v16 }
 0x2aa   :  { %1356 = vmatpush3.bf16.msra.mxu1 %v1355_v19 }
 0x354   :  { %v603_v20 = vpop.f32.mrb[8].mxu0 }
 0x355   :  { %v605_v23 = vpop.f32.mrb[9].mxu0 }
 0x360   :  { %v787_v24 = vpop.f32.mrb[2].mxu1 }
 0x361   :  { %v1362_v25 = vadd.f32 %v787_v24, %v603_v20  ;;  %v789_v26 = vpop.f32.mrb[3].mxu1 }
 0x362   :  { %v1363_v28 = vadd.f32 %v789_v26, %v605_v23 }
 0x363   :  { %v1951_v29 = vadd.f32 %v1362_v25, %v804_v27 }
 0x364   :  { %v1953_v31 = vadd.f32 %v1363_v28, %v804_v27  ;;  %v793_v12 = vpop.f32.mrb[0].mxu1 }
 0x365   :  { %v795_v22 = vpop.f32.mrb[1].mxu1  ;;  %v814_v33 = vmax.f32 %v1951_v29, 0.0  ;;  %v1959_v34 = vadd.f32 %v808_v30, %v793_v12 }
 0x366   :  { %v815_v21 = vmax.f32 %v1953_v31, 0.0  ;;  %v1956_v32 = vadd.f32 %v808_v30, %v795_v22 }
 0x367   :  { %v816_v36 = vmax.f32 %v1959_v34, 0.0 }
 0x368   :  { %v817_v35 = vmax.f32 %v1956_v32, 0.0  ;;  %914 = vmatprep.mubr.f32.mxu1 %v815_v21 }
 0x369   :  { %915 = vmatmul.mubr.f32.vlgmr.msra.gmra.mrb[4].mxu1 %v814_v33 }
 0x36a   :  { %919 = vmatprep.mubr.f32.mxu1 %v817_v35 }
 0x36d   :  { %920 = vmatmul.mubr.f32.gmra.mrb[6].mxu1 %v816_v36 }
 0x43c   :  { %v1289_v42 = vpop.f32.mrb[4].mxu1 }
 0x43d   :  { %v1290_v43 = vpop.f32.mrb[5].mxu1 }
 0x43e   :  { %v1291_v44 = vadd.f32 %v1290_v43, %v1289_v42 }
 0x440   :  { %v1292_v45 = vpop.f32.mrb[6].mxu1 }
 0x441   :  { %v1293_v46 = vpop.f32.mrb[7].mxu1 }
 0x442   :  { %v1294_v47 = vadd.f32 %v1293_v46, %v1292_v45 }
 0x444   :  { %v1358_v48 = vpack.c.bf16 %v1294_v47, %v1291_v44 }
 0x446   :  { %1359 = vmatpush3.bf16.msra.mxu0 %v1358_v48 }
 0x449   :  { %1306 = vmatmul.mubr.msk.f32.vlgmr.msra.gmra.mrb[10].mxu0 %vm530_vm3, %v925_v49 }
 0x44a   :  { %1310 = vmatprep.mubr.msk.f32.mxu0 %vm1002_vm5, %v1000_v50 }
 0x51c   :  { %v995_v51 = vpop.f32.mrb[10].mxu0 }
 0x51d   :  { %v999_v52 = vmax.f32 %v995_v51, 0.0  ;;  %v1307_v53 = vpop.f32.mrb[11].mxu0 }
 0x51f   :  { %1308 = vmatprep.subr.msk.mxu0 %vm1009_vm6, %v999_v52 }
 0x520   :  { %1309 = vmatpush3.msk.msra.mxu0 %vm1009_vm6, %v999_v52 }
 0x521   :  { %1311 = vmatmul.mubr.msk.f32.vlgmr.msra.gmra.mrb[12].mxu0 %vm1002_vm5, %v1001_v54  ;;  %1253 = vmatprep.subr.msk.mxu0 %vm1117_vm7, %v1109_v56 }
 0x522   :  { %1186 = vmatprep.mubr.f32.mxu0 %v1656_v0  ;;  %1254 = vmatpush1.msk.msra.mxu0 %vm1117_vm7, %v1252_v55 }
 0x5f4   :  { %v1312_v57 = vpop.f32.mrb[12].mxu0 }
 0x5f5   :  { %v1251_v58 = vmul.f32 -1.442695, %v1312_v57  ;;  %v1079_v59 = vpop.f32.mrb[13].mxu0 }
 0x5f6   :  { %v1250_v60 = vmul.f32 -1.442695, %v1079_v59 }
 0x5f7   :  { %1405 = vpow2.f32 %v1251_v58 }
 0x5f8   :  { %1407 = vpow2.f32 %v1250_v60 }
 0x601   :  { %v1406_v61 = vpop.eup %1405 }
 0x602   :  { %v1408_v62 = vpop.eup %1407  ;;  %v1095_v1 = vadd.f32 1.0, %v1406_v61 }
 0x603   :  { %v1094_v63 = vadd.f32 1.0, %v1408_v62 }
 0x605   :  { %1409 = vrcp.f32 %v1094_v63 }
 0x606   :  { %1411 = vrcp.f32 %v1095_v1 }
 0x60f   :  { %v1410_v2 = vpop.eup %1409 }
 0x610   :  { %1255 = vmatmul.mubr.msk.f32.vlgmr.msra.gmra.mrb[14].mxu0 %vm1110_vm8, %v1410_v2  ;;  %v1412_v3 = vpop.eup %1411 }
 0x611   :  { %1192 = vmatprep.mubr.f32.mxu0 %v1656_v0  ;;  %v269_v0 = vadd.f32 %v265_v10, %v1896_v39 }
 0x614   :  { %1256 = vmatmul.mubr.msk.f32.gmra.mrb[16].mxu0 %vm1110_vm8, %v1412_v3 }
 0x6e3   :  { %v1188_v5 = vpop.f32.mrb[14].mxu0 }
 0x6e4   :  { %v1199_v7 = vmul.f32 %v1188_v5, %v814_v33  ;;  %v1190_v8 = vpop.f32.mrb[15].mxu0 }
 0x6e5   :  { %v1200_v11 = vmul.f32 %v1190_v8, %v815_v21 }
 0x6e6   :  { %v1203_v13 = vadd.f32 %v1199_v7, %v267_v6 }
 0x6e7   :  { %v1204_v14 = vadd.f32 %v1200_v11, %v268_v9  ;;  %v1194_v15 = vpop.f32.mrb[16].mxu0 }
 0x6e8   :  { %1207 = vst [vmem:[#allocation17] sm:$0xff] %v1203_v13  ;;  %v1201_v16 = vmul.f32 %v1194_v15, %v816_v36  ;;  %v1196_v37 = vpop.f32.mrb[17].mxu0 }
 0x6e9   :  { %1208 = vst [vmem:[#allocation17 + $0x8] sm:$0xff] %v1204_v14  ;;  %v1202_v38 = vmul.f32 %v1196_v37, %v817_v35 }
 0x6ea   :  { %v1205_v18 = vadd.f32 %v1201_v16, %v269_v0 }
 0x6eb   :  { %v1206_v19 = vadd.f32 %v1202_v38, %v270_v17 }
 0x6ec   :  { %1209 = vst [vmem:[#allocation17 + $0x10] sm:$0xff] %v1205_v18 }
 0x6ed   :  { %1210 = vst [vmem:[#allocation17 + $0x18] sm:$0xff] %v1206_v19 }
 0x6ee   :  { %1622 = shalt.err (!%p1619_p6)
}
 0x6ef   :  { %s1623_s7 = scalar_lea.hbm %s2004_s9, 512 }
 0x6f0   :  { %p1624_p7 = scmp.ne.s32.totalorder %s2004_s9, %s1623_s7  ;;  %p1627_p8 = scmp.lt.u32.totalorder %s1623_s7, %s2004_s9 }
 0x6f2   :  { %p1629_p9 = pnand %p1627_p8, %p1624_p7 }
 0x6f4   :  { %1632 = shalt.err (!%p1629_p9)
}
 0x6f5   :  { %s1665_s13 = smov 256   ;;  %s1666_s1 = smov 16  }
 0x6f6   :  { %1222 = dma.vmem_to_hbm [thread:$0]  %s1217_s24, 512, %s2004_s9, [#allocation4], %s1665_s13, %s1665_s13, %s1666_s1  }
 0x6f7   :  { %1643 = dma.done.wait [#allocation4], 512  }
 0x6f8   :  { %1644 = vsyncadd [#allocation4], 4294966784 }
 0x6f9   :  { %1226 = vsyncpa [#allocation3], 1 }
 0x6fa   :  { %1227 = vsyncpa [#allocation6], 1 }
 0x6fb   :  { %1228 = vsyncpa [#allocation9], 1 }
 0x6fc   :  { %1229 = vsyncpa [#allocation12], 1 }
 0x6fd   :  { %1230 = vsyncpa [#allocation15], 1 }
 0x6fe   :  { %1231 = vsyncpa [#allocation4], 1 }

</bundles_post_ra>
